<compile_context>
chip_gen: v7x
topology: tpu7x:2x2x1
jax: 0.10.0
libtpu: 0.0.40
codegen_flags: <defaults>
</compile_context>

<pallas_src>
import functools

import jax
import jax.numpy as jnp
from jax.experimental import pallas as pl
from jax.experimental.pallas import tpu as pltpu


def _round_up(x, m):
    return ((x + m - 1) // m) * m


def _pick_chunk(l_out, cap=1024):
    """Largest multiple of 128 dividing l_out and <= cap.

    Bounds the in-register (Cout, chunk) f32 accumulator and the (K*K*Cin,
    chunk) stacked operand so they never spill vregs.
    """
    best = 128
    c = 128
    while c <= min(l_out, cap):
        if l_out % c == 0:
            best = c
        c += 128
    return best


def _make_convd_kernel(k, wp, cin, cout, b_blk, l_out, chunk, neg_slope):
    """Fused im2col + single-dot conv + bias + LeakyReLU for a batch block.

    Flat-row trick (stride-1 conv on the padded image): for dense output flat
    position q = oh*Wp + ow, the (kh, kw) tap lives at padded-input flat
    position q + kh*Wp + kw.  Positions with ow >= OW wrap into the next row
    and are garbage; they are sliced away in the wrapper.
    """
    offsets = [kh * wp + kw for kh in range(k) for kw in range(k)]
    n_chunks = l_out // chunk

    def kernel(x_ref, w_ref, b_ref, o_ref, stack_ref):
        # x_ref:     (B_blk, Cin, L_in)   operand dtype, zero tail-padded
        # w_ref:     (Cout, K*K*Cin)      operand dtype, resident across steps
        # b_ref:     (Cout, 1)            f32, resident across steps
        # o_ref:     (B_blk, Cout, L_out) f32, lane-dense
        # stack_ref: (K*K*Cin, chunk)     VMEM im2col scratch
        w = w_ref[...]                             # hoisted: loaded once/step
        bias = b_ref[...].astype(jnp.float32)      # (Cout, 1)
        for b in range(b_blk):                     # static unroll (small)
            for c in range(n_chunks):              # static unroll, bounds acc
                base = c * chunk
                # Fused im2col: pack the K*K lane-shifted taps of this lane
                # chunk into one (K*K*Cin, chunk) operand in VMEM.
                for t, off in enumerate(offsets):
                    stack_ref[t * cin:(t + 1) * cin, :] = (
                        x_ref[b, :, base + off: base + off + chunk])
                # Single contraction-(K*K*Cin) MXU dot, strict f32 accumulate.
                acc = jnp.dot(w, stack_ref[...],
                              preferred_element_type=jnp.float32) + bias
                # LeakyReLU(neg_slope) in f32; lane-dense (unmasked) store.
                o_ref[b, :, base: base + chunk] = jnp.maximum(
                    acc, neg_slope * acc).astype(o_ref.dtype)

    return kernel


@functools.partial(jax.jit,
                   static_argnames=("kernel_size", "stride", "operand_dtype"))
def convd_forward(x, weight, bias, *, kernel_size, stride,
                  operand_dtype=jnp.bfloat16):
    """x: (N, Cin, H, W) f32; weight: (Cout, Cin, K, K); bias: (Cout,).

    Matches PyTorch ReflectionPad2d(K//2) + Conv2d(K, stride) + LeakyReLU(0.2).
    Operands default to bf16 (MXU-native on all generations, halves HBM
    traffic on this bandwidth-bound kernel); accumulation and the epilogue are
    f32.  Pass operand_dtype=jnp.float32 for exact f32 semantics.
    """
    n, cin, h, w = x.shape
    cout = weight.shape[0]
    k = kernel_size
    pad = k // 2

    # ReflectionPad2d(k//2): boundary mirroring is one small fused wrapper
    # pass; it is not expressible as a BlockSpec window.
    x_pad = jnp.pad(x, ((0, 0), (0, 0), (pad, pad), (pad, pad)), mode="reflect")
    hp, wp = h + 2 * pad, w + 2 * pad

    # Dense (stride-1) conv extents on the padded grid; the strided output is
    # a subsample of the dense one (stride handled in the wrapper for now).
    oh_d, ow_d = hp - k + 1, wp - k + 1

    # Lane-dense flat extents (multiples of 128).
    l_out = _round_up(oh_d * wp, 128)          # dense output length per image
    max_off = (k - 1) * (wp + 1)               # largest tap offset
    l_in = _round_up(l_out + max_off, 128)     # flat input length per image

    x_flat = x_pad.reshape(n, cin, hp * wp)                        # contiguous
    x_flat = jnp.pad(x_flat, ((0, 0), (0, 0), (0, l_in - hp * wp)))
    x_flat = x_flat.astype(operand_dtype)      # zero tail-pad keeps tap reads defined

    # (Cout, K*K*Cin): column order (kh, kw, ci) matches the in-kernel stack.
    w2d = weight.transpose(0, 2, 3, 1).reshape(cout, k * k * cin)
    w2d = w2d.astype(operand_dtype)
    b_col = bias.reshape(cout, 1).astype(jnp.float32)

    chunk = _pick_chunk(l_out)

    # ---- VMEM budget (queried per generation) and batch-block size. -------
    elt = jnp.dtype(operand_dtype).itemsize
    sub = max(8, 32 // elt)                    # sublane padding multiple
    cin_v = _round_up(cin, sub)
    cout_v = _round_up(cout, 8)                # output is f32
    per_image = 2 * (cin_v * l_in * elt + cout_v * l_out * 4)   # double-buffered
    resident = (cout_v * _round_up(k * k * cin, 128) * elt      # weights
                + cout_v * 128 * 4                              # bias
                + _round_up(k * k * cin, sub) * chunk * elt)    # im2col scratch
    try:
        phys_vmem = int(pltpu.get_tpu_info().vmem_capacity_bytes)
    except Exception:
        phys_vmem = 64 << 20                   # v7x per-TC size as safe fallback
    usable = (phys_vmem * 3) // 4              # headroom for compiler scratch

    b_blk = 1
    for b in range(1, n + 1):                  # largest divisor of N that fits
        if n % b == 0 and b * per_image + resident + (2 << 20) <= usable:
            b_blk = b
    vmem_limit = int(min(max(b_blk * per_image + resident + (2 << 20), 16 << 20),
                         usable))

    kernel = _make_convd_kernel(k, wp, cin, cout, b_blk, l_out, chunk, 0.2)

    y = pl.pallas_call(
        kernel,
        out_shape=jax.ShapeDtypeStruct((n, cout, l_out), jnp.float32),
        grid_spec=pltpu.PrefetchScalarGridSpec(
            num_scalar_prefetch=0,
            grid=(n // b_blk,),
            in_specs=[
                # One batch block of flat padded images per step.
                pl.BlockSpec((b_blk, cin, l_in), lambda i: (i, 0, 0)),
                # Weights / bias: constant index map -> resident, no re-DMA.
                pl.BlockSpec((cout, k * k * cin), lambda i: (0, 0)),
                pl.BlockSpec((cout, 1), lambda i: (0, 0)),
            ],
            out_specs=pl.BlockSpec((b_blk, cout, l_out), lambda i: (i, 0, 0)),
            scratch_shapes=[pltpu.VMEM((k * k * cin, chunk), operand_dtype)],
        ),
        compiler_params=pltpu.CompilerParams(
            dimension_semantics=("parallel",),
            vmem_limit_bytes=vmem_limit),
    )(x_flat, w2d, b_col)

    # Recover NCHW: drop the flat-row wrap garbage and trim columns (one fused
    # XLA copy; consumers accepting the lane-dense layout can skip it), then
    # subsample if strided.
    dense = y[:, :, :oh_d * wp].reshape(n, cout, oh_d, wp)[:, :, :, :ow_d]
    if stride > 1:
        dense = dense[:, :, ::stride, ::stride]
    return dense


if __name__ == "__main__":
    # Module config: convd(inputchannel=4, outchannel=8, kernel_size=3, stride=1)
    in_ch, out_ch, ksize, stride = 4, 8, 3, 1
    N, H, W = 2, 16, 16
    pad = ksize // 2

    key = jax.random.PRNGKey(0)
    kx, kw_, kb = jax.random.split(key, 3)
    x = jax.random.normal(kx, (N, in_ch, H, W), dtype=jnp.float32)
    # Deterministic parameter init (synthetic, not a checkpoint load).
    fan_in = in_ch * ksize * ksize
    weight = jax.random.uniform(kw_, (out_ch, in_ch, ksize, ksize),
                                minval=-1.0, maxval=1.0,
                                dtype=jnp.float32) / jnp.sqrt(fan_in)
    bias = jax.random.uniform(kb, (out_ch,), minval=-0.1, maxval=0.1,
                              dtype=jnp.float32)

    def reference(xf, wf, bf):
        xp = jnp.pad(xf, ((0, 0), (0, 0), (pad, pad), (pad, pad)),
                     mode="reflect")
        r = jax.lax.conv_general_dilated(
            xp, wf, window_strides=(stride, stride), padding="VALID",
            dimension_numbers=("NCHW", "OIHW", "NCHW"),
            precision=jax.lax.Precision.HIGHEST)
        r = r + bf.reshape(1, out_ch, 1, 1)
        return jnp.where(r > 0, r, 0.2 * r)

    # Default path (bf16 operands, f32 accumulation): compare against the f32
    # reference evaluated on bf16-quantized operands (MXU bf16 products are
    # exact in f32, so only accumulation order differs).
    y_bf16 = convd_forward(x, weight, bias, kernel_size=ksize, stride=stride)
    jax.block_until_ready(y_bf16)
    ref_q = reference(x.astype(jnp.bfloat16).astype(jnp.float32),
                      weight.astype(jnp.bfloat16).astype(jnp.float32), bias)
    assert y_bf16.shape == ref_q.shape, (y_bf16.shape, ref_q.shape)
    assert jnp.allclose(y_bf16, ref_q, atol=2e-3, rtol=2e-3)

    # Exact-f32 operand path.
    y_f32 = convd_forward(x, weight, bias, kernel_size=ksize, stride=stride,
                          operand_dtype=jnp.float32)
    jax.block_until_ready(y_f32)
    ref_f = reference(x, weight, bias)
    assert y_f32.shape == ref_f.shape, (y_f32.shape, ref_f.shape)
    assert jnp.allclose(y_f32, ref_f, atol=1e-3, rtol=1e-3)

    print("KERNEL_OK")
</pallas_src>

<mosaic_0001>
module attributes {stable_mosaic.version = 11 : i64} {
  func.func @kernel(%arg0: i32, %arg1: memref<2x4x512xbf16, #tpu.memory_space<vmem>>, %arg2: memref<8x36xbf16, #tpu.memory_space<vmem>>, %arg3: memref<8x1xf32, #tpu.memory_space<vmem>>, %arg4: memref<2x8x384xf32, #tpu.memory_space<vmem>>, %arg5: memref<36x384xbf16, #tpu.memory_space<vmem>>) attributes {dimension_semantics = [#tpu.dimension_semantics<parallel>], iteration_bounds = array<i64: 1>, scalar_prefetch = 0 : i64, scratch_operands = 1 : i64, tpu.core_type = #tpu.core_type<tc>, window_params = [{transform_indices = @transform_0, window_bounds = array<i64: 2, 4, 512>}, {pipeline_mode = #tpu.pipeline_mode<synchronous>, transform_indices = @transform_1, window_bounds = array<i64: 8, 36>}, {pipeline_mode = #tpu.pipeline_mode<synchronous>, transform_indices = @transform_2, window_bounds = array<i64: 8, 1>}, {transform_indices = @transform_3, window_bounds = array<i64: 2, 8, 384>}]} {
    %c0 = arith.constant 0 : index
    %c0_0 = arith.constant 0 : index
    %0 = vector.load %arg2[%c0, %c0_0] : memref<8x36xbf16, #tpu.memory_space<vmem>>, vector<8x36xbf16>
    %c0_1 = arith.constant 0 : index
    %c0_2 = arith.constant 0 : index
    %1 = vector.load %arg3[%c0_1, %c0_2] : memref<8x1xf32, #tpu.memory_space<vmem>>, vector<8x1xf32>
    %c0_3 = arith.constant 0 : index
    %c0_4 = arith.constant 0 : index
    %c0_5 = arith.constant 0 : index
    %2 = vector.load %arg1[%c0_3, %c0_4, %c0_5] : memref<2x4x512xbf16, #tpu.memory_space<vmem>>, vector<1x4x384xbf16>
    %3 = vector.shape_cast %2 : vector<1x4x384xbf16> to vector<4x384xbf16>
    %c0_6 = arith.constant 0 : index
    %c0_7 = arith.constant 0 : index
    %4 = vector.load %arg5[%c0_6, %c0_7] : memref<36x384xbf16, #tpu.memory_space<vmem>>, vector<4x384xbf16>
    tpu.vector_store %arg5[%c0_6, %c0_7], %3 {strides = array<i32>} : memref<36x384xbf16, #tpu.memory_space<vmem>>, vector<4x384xbf16>,
    %c0_8 = arith.constant 0 : index
    %c0_9 = arith.constant 0 : index
    %c1 = arith.constant 1 : index
    %5 = vector.load %arg1[%c0_8, %c0_9, %c1] : memref<2x4x512xbf16, #tpu.memory_space<vmem>>, vector<1x4x384xbf16>
    %6 = vector.shape_cast %5 : vector<1x4x384xbf16> to vector<4x384xbf16>
    %c4 = arith.constant 4 : index
    %c0_10 = arith.constant 0 : index
    %7 = vector.load %arg5[%c4, %c0_10] : memref<36x384xbf16, #tpu.memory_space<vmem>>, vector<4x384xbf16>
    tpu.vector_store %arg5[%c4, %c0_10], %6 {strides = array<i32>} : memref<36x384xbf16, #tpu.memory_space<vmem>>, vector<4x384xbf16>,
    %c0_11 = arith.constant 0 : index
    %c0_12 = arith.constant 0 : index
    %c2 = arith.constant 2 : index
    %8 = vector.load %arg1[%c0_11, %c0_12, %c2] : memref<2x4x512xbf16, #tpu.memory_space<vmem>>, vector<1x4x384xbf16>
    %9 = vector.shape_cast %8 : vector<1x4x384xbf16> to vector<4x384xbf16>
    %c8 = arith.constant 8 : index
    %c0_13 = arith.constant 0 : index
    %10 = vector.load %arg5[%c8, %c0_13] : memref<36x384xbf16, #tpu.memory_space<vmem>>, vector<4x384xbf16>
    tpu.vector_store %arg5[%c8, %c0_13], %9 {strides = array<i32>} : memref<36x384xbf16, #tpu.memory_space<vmem>>, vector<4x384xbf16>,
    %c0_14 = arith.constant 0 : index
    %c0_15 = arith.constant 0 : index
    %c18 = arith.constant 18 : index
    %11 = vector.load %arg1[%c0_14, %c0_15, %c18] : memref<2x4x512xbf16, #tpu.memory_space<vmem>>, vector<1x4x384xbf16>
    %12 = vector.shape_cast %11 : vector<1x4x384xbf16> to vector<4x384xbf16>
    %c12 = arith.constant 12 : index
    %c0_16 = arith.constant 0 : index
    %13 = vector.load %arg5[%c12, %c0_16] : memref<36x384xbf16, #tpu.memory_space<vmem>>, vector<4x384xbf16>
    tpu.vector_store %arg5[%c12, %c0_16], %12 {strides = array<i32>} : memref<36x384xbf16, #tpu.memory_space<vmem>>, vector<4x384xbf16>,
    %c0_17 = arith.constant 0 : index
    %c0_18 = arith.constant 0 : index
    %c19 = arith.constant 19 : index
    %14 = vector.load %arg1[%c0_17, %c0_18, %c19] : memref<2x4x512xbf16, #tpu.memory_space<vmem>>, vector<1x4x384xbf16>
    %15 = vector.shape_cast %14 : vector<1x4x384xbf16> to vector<4x384xbf16>
    %c16 = arith.constant 16 : index
    %c0_19 = arith.constant 0 : index
    %16 = vector.load %arg5[%c16, %c0_19] : memref<36x384xbf16, #tpu.memory_space<vmem>>, vector<4x384xbf16>
    tpu.vector_store %arg5[%c16, %c0_19], %15 {strides = array<i32>} : memref<36x384xbf16, #tpu.memory_space<vmem>>, vector<4x384xbf16>,
    %c0_20 = arith.constant 0 : index
    %c0_21 = arith.constant 0 : index
    %c20 = arith.constant 20 : index
    %17 = vector.load %arg1[%c0_20, %c0_21, %c20] : memref<2x4x512xbf16, #tpu.memory_space<vmem>>, vector<1x4x384xbf16>
    %18 = vector.shape_cast %17 : vector<1x4x384xbf16> to vector<4x384xbf16>
    %c20_22 = arith.constant 20 : index
    %c0_23 = arith.constant 0 : index
    %19 = vector.load %arg5[%c20_22, %c0_23] : memref<36x384xbf16, #tpu.memory_space<vmem>>, vector<4x384xbf16>
    tpu.vector_store %arg5[%c20_22, %c0_23], %18 {strides = array<i32>} : memref<36x384xbf16, #tpu.memory_space<vmem>>, vector<4x384xbf16>,
    %c0_24 = arith.constant 0 : index
    %c0_25 = arith.constant 0 : index
    %c36 = arith.constant 36 : index
    %20 = vector.load %arg1[%c0_24, %c0_25, %c36] : memref<2x4x512xbf16, #tpu.memory_space<vmem>>, vector<1x4x384xbf16>
    %21 = vector.shape_cast %20 : vector<1x4x384xbf16> to vector<4x384xbf16>
    %c24 = arith.constant 24 : index
    %c0_26 = arith.constant 0 : index
    %22 = vector.load %arg5[%c24, %c0_26] : memref<36x384xbf16, #tpu.memory_space<vmem>>, vector<4x384xbf16>
    tpu.vector_store %arg5[%c24, %c0_26], %21 {strides = array<i32>} : memref<36x384xbf16, #tpu.memory_space<vmem>>, vector<4x384xbf16>,
    %c0_27 = arith.constant 0 : index
    %c0_28 = arith.constant 0 : index
    %c37 = arith.constant 37 : index
    %23 = vector.load %arg1[%c0_27, %c0_28, %c37] : memref<2x4x512xbf16, #tpu.memory_space<vmem>>, vector<1x4x384xbf16>
    %24 = vector.shape_cast %23 : vector<1x4x384xbf16> to vector<4x384xbf16>
    %c28 = arith.constant 28 : index
    %c0_29 = arith.constant 0 : index
    %25 = vector.load %arg5[%c28, %c0_29] : memref<36x384xbf16, #tpu.memory_space<vmem>>, vector<4x384xbf16>
    tpu.vector_store %arg5[%c28, %c0_29], %24 {strides = array<i32>} : memref<36x384xbf16, #tpu.memory_space<vmem>>, vector<4x384xbf16>,
    %c0_30 = arith.constant 0 : index
    %c0_31 = arith.constant 0 : index
    %c38 = arith.constant 38 : index
    %26 = vector.load %arg1[%c0_30, %c0_31, %c38] : memref<2x4x512xbf16, #tpu.memory_space<vmem>>, vector<1x4x384xbf16>
    %27 = vector.shape_cast %26 : vector<1x4x384xbf16> to vector<4x384xbf16>
    %c32 = arith.constant 32 : index
    %c0_32 = arith.constant 0 : index
    %28 = vector.load %arg5[%c32, %c0_32] : memref<36x384xbf16, #tpu.memory_space<vmem>>, vector<4x384xbf16>
    tpu.vector_store %arg5[%c32, %c0_32], %27 {strides = array<i32>} : memref<36x384xbf16, #tpu.memory_space<vmem>>, vector<4x384xbf16>,
    %c0_33 = arith.constant 0 : index
    %c0_34 = arith.constant 0 : index
    %29 = vector.load %arg5[%c0_33, %c0_34] : memref<36x384xbf16, #tpu.memory_space<vmem>>, vector<36x384xbf16>
    %cst = arith.constant dense<0.000000e+00> : vector<8x384xf32>
    %30 = tpu.matmul %0, %29, %cst {dimension_numbers = #tpu.dot_dimension_numbers<[1], [0], [0], [1], [0, 0, 1, 1], [], []>} : vector<8x36xbf16>, vector<36x384xbf16>, vector<8x384xf32> -> vector<8x384xf32>
    %31 = vector.broadcast %1 : vector<8x1xf32> to vector<8x384xf32>
    %32 = arith.addf %30, %31 : vector<8x384xf32>
    %cst_35 = arith.constant 2.000000e-01 : f32
    %33 = vector.broadcast %cst_35 : f32 to vector<8x384xf32>
    %34 = arith.mulf %33, %32 : vector<8x384xf32>
    %35 = arith.maximumf %32, %34 : vector<8x384xf32>
    %c0_36 = arith.constant 0 : index
    %c0_37 = arith.constant 0 : index
    %c0_38 = arith.constant 0 : index
    %36 = vector.load %arg4[%c0_36, %c0_37, %c0_38] : memref<2x8x384xf32, #tpu.memory_space<vmem>>, vector<1x8x384xf32>
    %37 = vector.shape_cast %36 : vector<1x8x384xf32> to vector<8x384xf32>
    %38 = vector.shape_cast %35 : vector<8x384xf32> to vector<1x8x384xf32>
    tpu.vector_store %arg4[%c0_36, %c0_37, %c0_38], %38 {strides = array<i32>} : memref<2x8x384xf32, #tpu.memory_space<vmem>>, vector<1x8x384xf32>,
    %c1_39 = arith.constant 1 : index
    %c0_40 = arith.constant 0 : index
    %c0_41 = arith.constant 0 : index
    %39 = vector.load %arg1[%c1_39, %c0_40, %c0_41] : memref<2x4x512xbf16, #tpu.memory_space<vmem>>, vector<1x4x384xbf16>
    %40 = vector.shape_cast %39 : vector<1x4x384xbf16> to vector<4x384xbf16>
    %c0_42 = arith.constant 0 : index
    %c0_43 = arith.constant 0 : index
    %41 = vector.load %arg5[%c0_42, %c0_43] : memref<36x384xbf16, #tpu.memory_space<vmem>>, vector<4x384xbf16>
    tpu.vector_store %arg5[%c0_42, %c0_43], %40 {strides = array<i32>} : memref<36x384xbf16, #tpu.memory_space<vmem>>, vector<4x384xbf16>,
    %c1_44 = arith.constant 1 : index
    %c0_45 = arith.constant 0 : index
    %c1_46 = arith.constant 1 : index
    %42 = vector.load %arg1[%c1_44, %c0_45, %c1_46] : memref<2x4x512xbf16, #tpu.memory_space<vmem>>, vector<1x4x384xbf16>
    %43 = vector.shape_cast %42 : vector<1x4x384xbf16> to vector<4x384xbf16>
    %c4_47 = arith.constant 4 : index
    %c0_48 = arith.constant 0 : index
    %44 = vector.load %arg5[%c4_47, %c0_48] : memref<36x384xbf16, #tpu.memory_space<vmem>>, vector<4x384xbf16>
    tpu.vector_store %arg5[%c4_47, %c0_48], %43 {strides = array<i32>} : memref<36x384xbf16, #tpu.memory_space<vmem>>, vector<4x384xbf16>,
    %c1_49 = arith.constant 1 : index
    %c0_50 = arith.constant 0 : index
    %c2_51 = arith.constant 2 : index
    %45 = vector.load %arg1[%c1_49, %c0_50, %c2_51] : memref<2x4x512xbf16, #tpu.memory_space<vmem>>, vector<1x4x384xbf16>
    %46 = vector.shape_cast %45 : vector<1x4x384xbf16> to vector<4x384xbf16>
    %c8_52 = arith.constant 8 : index
    %c0_53 = arith.constant 0 : index
    %47 = vector.load %arg5[%c8_52, %c0_53] : memref<36x384xbf16, #tpu.memory_space<vmem>>, vector<4x384xbf16>
    tpu.vector_store %arg5[%c8_52, %c0_53], %46 {strides = array<i32>} : memref<36x384xbf16, #tpu.memory_space<vmem>>, vector<4x384xbf16>,
    %c1_54 = arith.constant 1 : index
    %c0_55 = arith.constant 0 : index
    %c18_56 = arith.constant 18 : index
    %48 = vector.load %arg1[%c1_54, %c0_55, %c18_56] : memref<2x4x512xbf16, #tpu.memory_space<vmem>>, vector<1x4x384xbf16>
    %49 = vector.shape_cast %48 : vector<1x4x384xbf16> to vector<4x384xbf16>
    %c12_57 = arith.constant 12 : index
    %c0_58 = arith.constant 0 : index
    %50 = vector.load %arg5[%c12_57, %c0_58] : memref<36x384xbf16, #tpu.memory_space<vmem>>, vector<4x384xbf16>
    tpu.vector_store %arg5[%c12_57, %c0_58], %49 {strides = array<i32>} : memref<36x384xbf16, #tpu.memory_space<vmem>>, vector<4x384xbf16>,
    %c1_59 = arith.constant 1 : index
    %c0_60 = arith.constant 0 : index
    %c19_61 = arith.constant 19 : index
    %51 = vector.load %arg1[%c1_59, %c0_60, %c19_61] : memref<2x4x512xbf16, #tpu.memory_space<vmem>>, vector<1x4x384xbf16>
    %52 = vector.shape_cast %51 : vector<1x4x384xbf16> to vector<4x384xbf16>
    %c16_62 = arith.constant 16 : index
    %c0_63 = arith.constant 0 : index
    %53 = vector.load %arg5[%c16_62, %c0_63] : memref<36x384xbf16, #tpu.memory_space<vmem>>, vector<4x384xbf16>
    tpu.vector_store %arg5[%c16_62, %c0_63], %52 {strides = array<i32>} : memref<36x384xbf16, #tpu.memory_space<vmem>>, vector<4x384xbf16>,
    %c1_64 = arith.constant 1 : index
    %c0_65 = arith.constant 0 : index
    %c20_66 = arith.constant 20 : index
    %54 = vector.load %arg1[%c1_64, %c0_65, %c20_66] : memref<2x4x512xbf16, #tpu.memory_space<vmem>>, vector<1x4x384xbf16>
    %55 = vector.shape_cast %54 : vector<1x4x384xbf16> to vector<4x384xbf16>
    %c20_67 = arith.constant 20 : index
    %c0_68 = arith.constant 0 : index
    %56 = vector.load %arg5[%c20_67, %c0_68] : memref<36x384xbf16, #tpu.memory_space<vmem>>, vector<4x384xbf16>
    tpu.vector_store %arg5[%c20_67, %c0_68], %55 {strides = array<i32>} : memref<36x384xbf16, #tpu.memory_space<vmem>>, vector<4x384xbf16>,
    %c1_69 = arith.constant 1 : index
    %c0_70 = arith.constant 0 : index
    %c36_71 = arith.constant 36 : index
    %57 = vector.load %arg1[%c1_69, %c0_70, %c36_71] : memref<2x4x512xbf16, #tpu.memory_space<vmem>>, vector<1x4x384xbf16>
    %58 = vector.shape_cast %57 : vector<1x4x384xbf16> to vector<4x384xbf16>
    %c24_72 = arith.constant 24 : index
    %c0_73 = arith.constant 0 : index
    %59 = vector.load %arg5[%c24_72, %c0_73] : memref<36x384xbf16, #tpu.memory_space<vmem>>, vector<4x384xbf16>
    tpu.vector_store %arg5[%c24_72, %c0_73], %58 {strides = array<i32>} : memref<36x384xbf16, #tpu.memory_space<vmem>>, vector<4x384xbf16>,
    %c1_74 = arith.constant 1 : index
    %c0_75 = arith.constant 0 : index
    %c37_76 = arith.constant 37 : index
    %60 = vector.load %arg1[%c1_74, %c0_75, %c37_76] : memref<2x4x512xbf16, #tpu.memory_space<vmem>>, vector<1x4x384xbf16>
    %61 = vector.shape_cast %60 : vector<1x4x384xbf16> to vector<4x384xbf16>
    %c28_77 = arith.constant 28 : index
    %c0_78 = arith.constant 0 : index
    %62 = vector.load %arg5[%c28_77, %c0_78] : memref<36x384xbf16, #tpu.memory_space<vmem>>, vector<4x384xbf16>
    tpu.vector_store %arg5[%c28_77, %c0_78], %61 {strides = array<i32>} : memref<36x384xbf16, #tpu.memory_space<vmem>>, vector<4x384xbf16>,
    %c1_79 = arith.constant 1 : index
    %c0_80 = arith.constant 0 : index
    %c38_81 = arith.constant 38 : index
    %63 = vector.load %arg1[%c1_79, %c0_80, %c38_81] : memref<2x4x512xbf16, #tpu.memory_space<vmem>>, vector<1x4x384xbf16>
    %64 = vector.shape_cast %63 : vector<1x4x384xbf16> to vector<4x384xbf16>
    %c32_82 = arith.constant 32 : index
    %c0_83 = arith.constant 0 : index
    %65 = vector.load %arg5[%c32_82, %c0_83] : memref<36x384xbf16, #tpu.memory_space<vmem>>, vector<4x384xbf16>
    tpu.vector_store %arg5[%c32_82, %c0_83], %64 {strides = array<i32>} : memref<36x384xbf16, #tpu.memory_space<vmem>>, vector<4x384xbf16>,
    %c0_84 = arith.constant 0 : index
    %c0_85 = arith.constant 0 : index
    %66 = vector.load %arg5[%c0_84, %c0_85] : memref<36x384xbf16, #tpu.memory_space<vmem>>, vector<36x384xbf16>
    %cst_86 = arith.constant dense<0.000000e+00> : vector<8x384xf32>
    %67 = tpu.matmul %0, %66, %cst_86 {dimension_numbers = #tpu.dot_dimension_numbers<[1], [0], [0], [1], [0, 0, 1, 1], [], []>} : vector<8x36xbf16>, vector<36x384xbf16>, vector<8x384xf32> -> vector<8x384xf32>
    %68 = vector.broadcast %1 : vector<8x1xf32> to vector<8x384xf32>
    %69 = arith.addf %67, %68 : vector<8x384xf32>
    %cst_87 = arith.constant 2.000000e-01 : f32
    %70 = vector.broadcast %cst_87 : f32 to vector<8x384xf32>
    %71 = arith.mulf %70, %69 : vector<8x384xf32>
    %72 = arith.maximumf %69, %71 : vector<8x384xf32>
    %c1_88 = arith.constant 1 : index
    %c0_89 = arith.constant 0 : index
    %c0_90 = arith.constant 0 : index
    %73 = vector.load %arg4[%c1_88, %c0_89, %c0_90] : memref<2x8x384xf32, #tpu.memory_space<vmem>>, vector<1x8x384xf32>
    %74 = vector.shape_cast %73 : vector<1x8x384xf32> to vector<8x384xf32>
    %75 = vector.shape_cast %72 : vector<8x384xf32> to vector<1x8x384xf32>
    tpu.vector_store %arg4[%c1_88, %c0_89, %c0_90], %75 {strides = array<i32>} : memref<2x8x384xf32, #tpu.memory_space<vmem>>, vector<1x8x384xf32>,
    return
  }
  func.func @transform_0(%arg0: i32) -> (i32, i32, i32) {
    %c0_i32 = arith.constant 0 : i32
    %c0_i32_0 = arith.constant 0 : i32
    %c0_i32_1 = arith.constant 0 : i32
    return %arg0, %c0_i32, %c0_i32_0 : i32, i32, i32
  }
  func.func @transform_1(%arg0: i32) -> (i32, i32) {
    %c0_i32 = arith.constant 0 : i32
    %c0_i32_0 = arith.constant 0 : i32
    %c0_i32_1 = arith.constant 0 : i32
    return %c0_i32, %c0_i32_0 : i32, i32
  }
  func.func @transform_2(%arg0: i32) -> (i32, i32) {
    %c0_i32 = arith.constant 0 : i32
    %c0_i32_0 = arith.constant 0 : i32
    %c0_i32_1 = arith.constant 0 : i32
    return %c0_i32, %c0_i32_0 : i32, i32
  }
  func.func @transform_3(%arg0: i32) -> (i32, i32, i32) {
    %c0_i32 = arith.constant 0 : i32
    %c0_i32_0 = arith.constant 0 : i32
    %c0_i32_1 = arith.constant 0 : i32
    return %arg0, %c0_i32, %c0_i32_0 : i32, i32, i32
  }
}

</mosaic_0001>

<bundles_post_ra>
// kernel: convd_forward.1
= control target key start
LH: loop header
LB: loop body
LE: loop exit
PB: predicated region body
PF: predicated region fallthrough
CT: control target
= control target key end

     0   :  { %v44_v0 = vlaneseq  ;;  %v970_v1 = vmov 1983009808   ;;  %s971_s16 = smov 126   ;;  %s972_s17 = smov 127   ;;  %v973_v14 = vmov 0.0   ;;  %vm980_vm0 = vmmov 0   ;;  %s1139_s0 = inlined_call_operand.vmem [shape: bf16[2,4,512], index: 0, kind: input, shape index: {}]   ;;  %s1140_s2 = inlined_call_operand.vmem [shape: f32[8,1], index: 2, kind: input, shape index: {}]   ;;  %s1141_s1 = inlined_call_operand.vmem [shape: bf16[8,36], index: 1, kind: input, shape index: {}]   ;;  %s1142_s3 = inlined_call_operand.vmem [shape: f32[2,8,384], index: 3, kind: output, shape index: {}]  }
   0x1   :  { %v42_v2 = vunpack.c.l.s4 %v970_v1  ;;  %v70_v3 = vld [vmem:[%s1139_s0] sm:$0xff]  ;;  %910 = vmatprep.subr.bf16.mxu1 %v973_v14  ;;  %s974_s18 = smov 110   ;;  %s975_s19 = smov 109   ;;  %v879_v15 = vld [vmem:[%s1139_s0 + $0x8] sm:$0xff]  ;;  %916 = vmatprep.mubr.msk.bf16.mxu1 %vm980_vm0, %v973_v14  ;;  %v981_v21 = vmov 0   ;;  %vm61_vm1 = vcmask 1043456  }
   0x2   :  { %v45_v4 = vshrl.u32 %v44_v0, 7  ;;  %v17_v5 = vld [vmem:[%s1139_s0] sm:$0x3f]  ;;  %v40_v7 = vcombine.low %v70_v3, %v70_v3  ;;  %v72_v10 = vcombine.high %v70_v3, %v70_v3  ;;  %s976_s20 = smov 108   ;;  %s977_s21 = smov 92   ;;  %v470_v16 = vcombine.low %v879_v15, %v879_v15  ;;  %388 = vmatprep.mubr.bf16.mxu0 %v981_v21  ;;  %942 = vset.pattern.permute.xlu0 %v981_v21 }
   0x3   :  { %v43_v6 = vunpack.c.0.s8 %v42_v2  ;;  %v19_v8 = vcombine.high %v17_v5, %v17_v5  ;;  %862 = vst.sshfl [vmem:[#allocation2] sm:$0xf pattern:$0x76325410] %v17_v5  ;;  %s978_s24 = smov 91   ;;  %s979_s25 = smov 90   ;;  %v500_v19 = vcombine.high %v879_v15, %v879_v15 }
   0x4   :  { %v16_v22 = vld [vmem:[%s1140_s2] sm:$0xff]  ;;  %vm94_vm2 = vcmask 1031168   ;;  %vm63_vm3 = vcmask 1039360   ;;  %vm125_vm4 = vcmask 900096   ;;  %vm156_vm5 = vcmask 891904  }
   0x5   :  { %v46_v9 = vsub.s32 %v43_v6, %v45_v4  ;;  %863 = vst.sshfl [vmem:[#allocation2 + $0x8] sm:$0x3 pattern:$0x76325410] %v19_v8  ;;  %v876_v48 = vld [vmem:[%s1139_s0 + $0x8] sm:$0x3f] }
   0x6   :  { %vm187_vm6 = vcmask 883712   ;;  %v449_v54 = vcombine.high %v876_v48, %v876_v48  ;;  %vm218_vm7 = vcmask 752640   ;;  %vm249_vm8 = vcmask 744448  }
   0x7   :  { %v79_v11 = vrot.slane %v70_v3, %v46_v9  ;;  %v47_v12 = vrot.slane %v40_v7, %v46_v9  ;;  %v86_v13 = vrot.slane %v72_v10, %v46_v9  ;;  %v484_v17 = vrot.slane %v879_v15, %v46_v9 }
   0x8   :  { %v477_v18 = vrot.slane %v470_v16, %v46_v9  ;;  %v514_v20 = vrot.slane %v500_v19, %v46_v9  ;;  %vm280_vm9 = vcmask 736256   ;;  %vm346_vm10 = vcmask 1041408  }
   0x9   :  { %87 = vrot.lane.b32.xlu1 %v79_v11, %s971_s16  ;;  %55 = vrot.lane.b32.xlu0 %v47_v12, %s972_s17  ;;  %vm342_vm11 = vcmask 293888  }
   0xd   :  { %89 = vrot.lane.b32.xlu1 %v86_v13, %s971_s16  ;;  %57 = vrot.lane.b32.xlu0 %v79_v11, %s972_s17 }
  0x11   :  { %120 = vrot.lane.b32.xlu1 %v79_v11, %s974_s18  ;;  %118 = vrot.lane.b32.xlu0 %v47_v12, %s974_s18 }
  0x15   :  { %151 = vrot.lane.b32.xlu1 %v86_v13, %s975_s19  ;;  %149 = vrot.lane.b32.xlu0 %v79_v11, %s975_s19 }
  0x19   :  { %182 = vrot.lane.b32.xlu1 %v79_v11, %s976_s20  ;;  %180 = vrot.lane.b32.xlu0 %v47_v12, %s976_s20 }
  0x1d   :  { %213 = vrot.lane.b32.xlu1 %v86_v13, %s977_s21  ;;  %211 = vrot.lane.b32.xlu0 %v79_v11, %s977_s21 }
  0x21   :  { %244 = vrot.lane.b32.xlu1 %v79_v11, %s978_s24  ;;  %242 = vrot.lane.b32.xlu0 %v47_v12, %s978_s24 }
  0x25   :  { %275 = vrot.lane.b32.xlu1 %v86_v13, %s979_s25  ;;  %273 = vrot.lane.b32.xlu0 %v79_v11, %s979_s25 }
  0x29   :  { %487 = vrot.lane.b32.xlu1 %v484_v17, %s972_s17  ;;  %485 = vrot.lane.b32.xlu0 %v477_v18, %s972_s17 }
  0x2d   :  { %517 = vrot.lane.b32.xlu1 %v514_v20, %s971_s16  ;;  %515 = vrot.lane.b32.xlu0 %v484_v17, %s971_s16 }
  0x31   :  { %547 = vrot.lane.b32.xlu1 %v484_v17, %s974_s18  ;;  %545 = vrot.lane.b32.xlu0 %v477_v18, %s974_s18 }
  0x35   :  { %577 = vrot.lane.b32.xlu1 %v514_v20, %s975_s19  ;;  %575 = vrot.lane.b32.xlu0 %v484_v17, %s975_s19 }
  0x39   :  { %607 = vrot.lane.b32.xlu1 %v484_v17, %s976_s20  ;;  %605 = vrot.lane.b32.xlu0 %v477_v18, %s976_s20 }
  0x3d   :  { %637 = vrot.lane.b32.xlu1 %v514_v20, %s977_s21  ;;  %635 = vrot.lane.b32.xlu0 %v484_v17, %s977_s21 }
  0x41   :  { %667 = vrot.lane.b32.xlu1 %v484_v17, %s978_s24  ;;  %665 = vrot.lane.b32.xlu0 %v477_v18, %s978_s24 }
  0x45   :  { %697 = vrot.lane.b32.xlu1 %v514_v20, %s979_s25  ;;  %695 = vrot.lane.b32.xlu0 %v484_v17, %s979_s25 }
  0x49   :  { %299 = vperm.xlu0 %942, %v16_v22  }
  0x7b   :  { %v88_v23 = vpop.permute.xlu1 %87  ;;  %v56_v24 = vpop.permute.xlu0 %55 }
  0x7c   :  { %v91_v27 = vrot.slane %v88_v23, 4  ;;  %v59_v28 = vrot.slane %v56_v24, 4 }
  0x7f   :  { %v90_v25 = vpop.permute.xlu1 %89  ;;  %v58_v26 = vpop.permute.xlu0 %57 }
  0x80   :  { %v92_v29 = vrot.slane %v90_v25, 4  ;;  %v60_v30 = vrot.slane %v58_v26, 4 }
  0x82   :  { %v93_v31 = vsel %vm61_vm1, %v91_v27, %v92_v29  ;;  %v96_v32 = vsel %vm94_vm2, %v90_v25, %v92_v29  ;;  %v62_v33 = vsel %vm61_vm1, %v59_v28, %v60_v30  ;;  %v65_v34 = vsel %vm63_vm3, %v58_v26, %v60_v30 }
  0x83   :  { %v95_v35 = vsel %vm94_vm2, %v88_v23, %v93_v31  ;;  %100 = vst [vmem:[#allocation2 + $0x14] sm:$0x3] %v96_v32  ;;  %v64_v36 = vsel %vm63_vm3, %v56_v24, %v62_v33  ;;  %69 = vst [vmem:[#allocation2 + $0x8] sm:$0xc] %v65_v34  ;;  %v121_v37 = vpop.permute.xlu1 %120  ;;  %v119_v38 = vpop.permute.xlu0 %118 }
  0x84   :  { %99 = vst [vmem:[#allocation2 + $0xc] sm:$0x33] %v95_v35  ;;  %68 = vst [vmem:[#allocation2] sm:$0xcc] %v64_v36  ;;  %v123_v39 = vrot.slane %v121_v37, 4  ;;  %v122_v40 = vrot.slane %v119_v38, 4 }
  0x86   :  { %v127_v41 = vsel %vm125_vm4, %v121_v37, %v123_v39  ;;  %v124_v42 = vsel %vm61_vm1, %v122_v40, %v123_v39 }
  0x87   :  { %131 = vst [vmem:[#allocation2 + $0x14] sm:$0xc] %v127_v41  ;;  %v126_v43 = vsel %vm125_vm4, %v119_v38, %v124_v42  ;;  %v152_v44 = vpop.permute.xlu1 %151  ;;  %v150_v45 = vpop.permute.xlu0 %149 }
  0x88   :  { %130 = vst [vmem:[#allocation2 + $0xc] sm:$0xcc] %v126_v43  ;;  %v154_v46 = vrot.slane %v152_v44, 4  ;;  %v153_v47 = vrot.slane %v150_v45, 4 }
  0x8a   :  { %v158_v49 = vsel %vm156_vm5, %v152_v44, %v154_v46  ;;  %v155_v50 = vsel %vm61_vm1, %v153_v47, %v154_v46 }
  0x8b   :  { %162 = vst [vmem:[#allocation2 + $0x20] sm:$0x3] %v158_v49  ;;  %v157_v51 = vsel %vm156_vm5, %v150_v45, %v155_v50  ;;  %v183_v52 = vpop.permute.xlu1 %182  ;;  %v181_v53 = vpop.permute.xlu0 %180  ;;  %v287_v63 = vld [vmem:[#allocation2] sm:$0xff] }
  0x8c   :  { %161 = vst [vmem:[#allocation2 + $0x18] sm:$0x33] %v157_v51  ;;  %v185_v55 = vrot.slane %v183_v52, 4  ;;  %v184_v56 = vrot.slane %v181_v53, 4  ;;  %v1082_v50 = vld [vmem:[%s1141_s1] sm:$0xf] }
  0x8e   :  { %v189_v57 = vsel %vm187_vm6, %v183_v52, %v185_v55  ;;  %v186_v58 = vsel %vm61_vm1, %v184_v56, %v185_v55  ;;  %v948_v59 = vld [vmem:[#allocation2 + $0x8] ss:$12 sps:$4 sm:$0xff]  }
  0x8f   :  { %193 = vst [vmem:[#allocation2 + $0x20] sm:$0xc] %v189_v57  ;;  %v188_v60 = vsel %vm187_vm6, %v181_v53, %v186_v58  ;;  %v214_v61 = vpop.permute.xlu1 %213  ;;  %v212_v62 = vpop.permute.xlu0 %211  ;;  %878 = vst.sshfl [vmem:[#allocation2 + $0x8] sm:$0x3 pattern:$0x76325410] %v449_v54  ;;  %911 = vmatpush3.bf16.msra.mxu1 %v948_v59 }
  0x90   :  { %v289_v0 = vld [vmem:[#allocation2 + $0xc] sm:$0xff]  ;;  %192 = vst [vmem:[#allocation2 + $0x18] sm:$0xcc] %v188_v60  ;;  %v216_v2 = vrot.slane %v214_v61, 4  ;;  %v215_v3 = vrot.slane %v212_v62, 4  ;;  %912 = vmatprep.subr.bf16.mxu1 %v973_v14 }
  0x91   :  { %v950_v1 = vld [vmem:[#allocation2 + $0x4] ss:$12 sps:$4 sm:$0xff]   ;;  %v864_v4 = vcombine.low %v287_v63, %v289_v0 }
  0x92   :  { %877 = vst.sshfl [vmem:[#allocation2] sm:$0xf pattern:$0x76325410] %v876_v48  ;;  %356 = vmatprep.subr.bf16.mxu0 %v950_v1  ;;  %v220_v5 = vsel %vm218_vm7, %v214_v61, %v216_v2  ;;  %v217_v6 = vsel %vm61_vm1, %v215_v3, %v216_v2 }
  0x93   :  { %357 = vmatpush1.bf16.msra.mxu0 %v864_v4  ;;  %224 = vst [vmem:[#allocation2 + $0x2c] sm:$0x3] %v220_v5  ;;  %v219_v7 = vsel %vm218_vm7, %v212_v62, %v217_v6  ;;  %v245_v8 = vpop.permute.xlu1 %244  ;;  %v243_v9 = vpop.permute.xlu0 %242 }
  0x94   :  { %223 = vst [vmem:[#allocation2 + $0x24] sm:$0x33] %v219_v7  ;;  %v247_v10 = vrot.slane %v245_v8, 4  ;;  %v246_v11 = vrot.slane %v243_v9, 4 }
  0x96   :  { %v251_v12 = vsel %vm249_vm8, %v245_v8, %v247_v10  ;;  %v248_v13 = vsel %vm61_vm1, %v246_v11, %v247_v10 }
  0x97   :  { %255 = vst [vmem:[#allocation2 + $0x2c] sm:$0xc] %v251_v12  ;;  %v250_v15 = vsel %vm249_vm8, %v243_v9, %v248_v13  ;;  %v276_v16 = vpop.permute.xlu1 %275  ;;  %v274_v17 = vpop.permute.xlu0 %273 }
  0x98   :  { %254 = vst [vmem:[#allocation2 + $0x24] sm:$0xcc] %v250_v15  ;;  %v278_v18 = vrot.slane %v276_v16, 4  ;;  %v277_v19 = vrot.slane %v274_v17, 4 }
  0x9a   :  { %v282_v20 = vsel %vm280_vm9, %v276_v16, %v278_v18  ;;  %v279_v22 = vsel %vm61_vm1, %v277_v19, %v278_v18 }
  0x9b   :  { %286 = vst [vmem:[#allocation2 + $0x38] sm:$0x3] %v282_v20  ;;  %v281_v23 = vsel %vm280_vm9, %v274_v17, %v279_v22  ;;  %v488_v24 = vpop.permute.xlu1 %487  ;;  %v486_v25 = vpop.permute.xlu0 %485 }
  0x9c   :  { %285 = vst [vmem:[#allocation2 + $0x30] sm:$0x33] %v281_v23  ;;  %v490_v26 = vrot.slane %v488_v24, 4  ;;  %v489_v27 = vrot.slane %v486_v25, 4 }
  0x9e   :  { %v493_v28 = vsel %vm63_vm3, %v488_v24, %v490_v26  ;;  %v491_v29 = vsel %vm61_vm1, %v489_v27, %v490_v26  ;;  %v952_v30 = vld [vmem:[#allocation2 + $0x20] ss:$12 sps:$4 sm:$0xff]  }
  0x9f   :  { %497 = vst [vmem:[#allocation2 + $0x8] sm:$0xc] %v493_v28  ;;  %v492_v31 = vsel %vm63_vm3, %v486_v25, %v491_v29  ;;  %v518_v32 = vpop.permute.xlu1 %517  ;;  %v516_v33 = vpop.permute.xlu0 %515  ;;  %v953_v34 = vld [vmem:[#allocation2 + $0x1c] ss:$12 sps:$4 sm:$0xff]   ;;  %v955_v35 = vld [vmem:[#allocation2 + $0x18] ss:$12 sps:$4 sm:$0xff]   ;;  %913 = vmatpush3.bf16.msra.mxu1 %v952_v30 }
  0xa0   :  { %496 = vst [vmem:[#allocation2] sm:$0xcc] %v492_v31  ;;  %v520_v36 = vrot.slane %v518_v32, 4  ;;  %v519_v37 = vrot.slane %v516_v33, 4  ;;  %358 = vmatprep.subr.bf16.mxu0 %v953_v34  ;;  %914 = vmatprep.subr.bf16.mxu1 %v973_v14 }
  0xa1   :  { %359 = vmatpush1.bf16.msra.mxu0 %v955_v35 }
  0xa2   :  { %v523_v38 = vsel %vm94_vm2, %v518_v32, %v520_v36  ;;  %v521_v39 = vsel %vm61_vm1, %v519_v37, %v520_v36  ;;  %v957_v40 = vld [vmem:[#allocation2 + $0x38] ss:$0 sps:$4 sm:$0x33]  }
  0xa3   :  { %527 = vst [vmem:[#allocation2 + $0x14] sm:$0x3] %v523_v38  ;;  %v522_v41 = vsel %vm94_vm2, %v516_v33, %v521_v39  ;;  %v548_v42 = vpop.permute.xlu1 %547  ;;  %v546_v43 = vpop.permute.xlu0 %545  ;;  %v295_v44 = vld [vmem:[#allocation2 + $0x30] sm:$0x33]  ;;  %v354_v48 = vsel %vm346_vm10, %v957_v40, 0 }
  0xa4   :  { %526 = vst [vmem:[#allocation2 + $0xc] sm:$0x33] %v522_v41  ;;  %v550_v45 = vrot.slane %v548_v42, 4  ;;  %v549_v46 = vrot.slane %v546_v43, 4  ;;  %v871_v47 = vcombine.high %v295_v44, %v295_v44  ;;  %915 = vmatpush3.bf16.msra.mxu1 %v354_v48  ;;  %v870_v49 = vcombine.low %v295_v44, %v295_v44 }
  0xa5   :  { %920 = vmatprep.subr.bf16.mxu1 %v973_v14 }
  0xa6   :  { %v553_v51 = vsel %vm125_vm4, %v548_v42, %v550_v45  ;;  %v551_v52 = vsel %vm61_vm1, %v549_v46, %v550_v45  ;;  %873 = vmatprep.subr.msk.bf16.mxu0 %vm346_vm10, %v871_v47  ;;  %v348_v56 = vsel %vm346_vm10, %v870_v49, 0 }
  0xa7   :  { %557 = vst [vmem:[#allocation2 + $0x14] sm:$0xc] %v553_v51  ;;  %v552_v53 = vsel %vm125_vm4, %v546_v43, %v551_v52  ;;  %v578_v54 = vpop.permute.xlu1 %577  ;;  %v576_v55 = vpop.permute.xlu0 %575  ;;  %361 = vmatpush1.bf16.msra.mxu0 %v348_v56  ;;  %917 = vmatmul.mubr.msk.bf16.vlgmr.msra.gmra.mrb[0].mxu1 %vm342_vm11, %v1082_v50 }
  0xa8   :  { %556 = vst [vmem:[#allocation2 + $0xc] sm:$0xcc] %v552_v53  ;;  %v580_v57 = vrot.slane %v578_v54, 4  ;;  %v579_v58 = vrot.slane %v576_v55, 4  ;;  %926 = vmatprep.mubr.msk.bf16.mxu1 %vm980_vm0, %v973_v14 }
  0xaa   :  { %v583_v59 = vsel %vm156_vm5, %v578_v54, %v580_v57  ;;  %v581_v60 = vsel %vm61_vm1, %v579_v58, %v580_v57  ;;  %874 = vmatmul.mubr.msk.bf16.vlgmr.msra.gmra.mrb[0].mxu0 %vm342_vm11, %v1082_v50 }
  0xab   :  { %587 = vst [vmem:[#allocation2 + $0x20] sm:$0x3] %v583_v59  ;;  %v582_v61 = vsel %vm156_vm5, %v576_v55, %v581_v60  ;;  %v608_v62 = vpop.permute.xlu1 %607  ;;  %v606_v63 = vpop.permute.xlu0 %605  ;;  %799 = vmatprep.mubr.bf16.mxu0 %v981_v21 }
  0xac   :  { %586 = vst [vmem:[#allocation2 + $0x18] sm:$0x33] %v582_v61  ;;  %v610_v0 = vrot.slane %v608_v62, 4  ;;  %v609_v1 = vrot.slane %v606_v63, 4 }
  0xae   :  { %v613_v2 = vsel %vm187_vm6, %v608_v62, %v610_v0  ;;  %v611_v3 = vsel %vm61_vm1, %v609_v1, %v610_v0  ;;  %v959_v4 = vld [vmem:[#allocation2 + $0x8] ss:$12 sps:$4 sm:$0xff]  }
  0xaf   :  { %617 = vst [vmem:[#allocation2 + $0x20] sm:$0xc] %v613_v2  ;;  %v612_v5 = vsel %vm187_vm6, %v606_v63, %v611_v3  ;;  %v638_v6 = vpop.permute.xlu1 %637  ;;  %v636_v7 = vpop.permute.xlu0 %635  ;;  %v960_v8 = vld [vmem:[#allocation2] ss:$12 sps:$4 sm:$0xff]   ;;  %v962_v9 = vld [vmem:[#allocation2 + $0x4] ss:$12 sps:$4 sm:$0xff]   ;;  %921 = vmatpush3.bf16.msra.mxu1 %v959_v4 }
  0xb0   :  { %616 = vst [vmem:[#allocation2 + $0x18] sm:$0xcc] %v612_v5  ;;  %v640_v10 = vrot.slane %v638_v6, 4  ;;  %v639_v11 = vrot.slane %v636_v7, 4  ;;  %767 = vmatprep.subr.bf16.mxu0 %v962_v9  ;;  %922 = vmatprep.subr.bf16.mxu1 %v973_v14 }
  0xb1   :  { %768 = vmatpush1.bf16.msra.mxu0 %v960_v8 }
  0xb2   :  { %v643_v21 = vsel %vm218_vm7, %v638_v6, %v640_v10  ;;  %v641_v12 = vsel %vm61_vm1, %v639_v11, %v640_v10 }
  0xb3   :  { %647 = vst [vmem:[#allocation2 + $0x2c] sm:$0x3] %v643_v21  ;;  %v642_v13 = vsel %vm218_vm7, %v636_v7, %v641_v12  ;;  %v668_v15 = vpop.permute.xlu1 %667  ;;  %v666_v16 = vpop.permute.xlu0 %665 }
  0xb4   :  { %646 = vst [vmem:[#allocation2 + $0x24] sm:$0x33] %v642_v13  ;;  %v670_v17 = vrot.slane %v668_v15, 4  ;;  %v669_v18 = vrot.slane %v666_v16, 4 }
  0xb6   :  { %v673_v19 = vsel %vm249_vm8, %v668_v15, %v670_v17  ;;  %v671_v20 = vsel %vm61_vm1, %v669_v18, %v670_v17 }
  0xb7   :  { %677 = vst [vmem:[#allocation2 + $0x2c] sm:$0xc] %v673_v19  ;;  %v672_v22 = vsel %vm249_vm8, %v666_v16, %v671_v20  ;;  %v698_v23 = vpop.permute.xlu1 %697  ;;  %v696_v24 = vpop.permute.xlu0 %695 }
  0xb8   :  { %676 = vst [vmem:[#allocation2 + $0x24] sm:$0xcc] %v672_v22  ;;  %v700_v25 = vrot.slane %v698_v23, 4  ;;  %v699_v26 = vrot.slane %v696_v24, 4 }
  0xba   :  { %v703_v27 = vsel %vm280_vm9, %v698_v23, %v700_v25  ;;  %v701_v28 = vsel %vm61_vm1, %v699_v26, %v700_v25 }
  0xbb   :  { %707 = vst [vmem:[#allocation2 + $0x38] sm:$0x3] %v703_v27  ;;  %v702_v29 = vsel %vm280_vm9, %v696_v24, %v701_v28 }
  0xbc   :  { %706 = vst [vmem:[#allocation2 + $0x30] sm:$0x33] %v702_v29 }
  0xbe   :  { %v963_v30 = vld [vmem:[#allocation2 + $0x20] ss:$12 sps:$4 sm:$0xff]  }
  0xbf   :  { %v964_v31 = vld [vmem:[#allocation2 + $0x18] ss:$12 sps:$4 sm:$0xff]   ;;  %v966_v32 = vld [vmem:[#allocation2 + $0x1c] ss:$12 sps:$4 sm:$0xff]   ;;  %923 = vmatpush3.bf16.msra.mxu1 %v963_v30 }
  0xc0   :  { %769 = vmatprep.subr.bf16.mxu0 %v966_v32  ;;  %924 = vmatprep.subr.bf16.mxu1 %v973_v14 }
  0xc1   :  { %770 = vmatpush1.bf16.msra.mxu0 %v964_v31 }
  0xc2   :  { %v968_v33 = vld [vmem:[#allocation2 + $0x38] ss:$0 sps:$4 sm:$0x33]  }
  0xc3   :  { %v716_v34 = vld [vmem:[#allocation2 + $0x30] sm:$0x33]  ;;  %v765_v36 = vsel %vm346_vm10, %v968_v33, 0 }
  0xc4   :  { %v894_v35 = vcombine.high %v716_v34, %v716_v34  ;;  %v893_v37 = vcombine.low %v716_v34, %v716_v34  ;;  %925 = vmatpush3.bf16.msra.mxu1 %v765_v36 }
  0xc6   :  { %896 = vmatprep.subr.msk.bf16.mxu0 %vm346_vm10, %v894_v35  ;;  %v759_v38 = vsel %vm346_vm10, %v893_v37, 0 }
  0xc7   :  { %772 = vmatpush1.bf16.msra.mxu0 %v759_v38  ;;  %927 = vmatmul.mubr.msk.bf16.vlgmr.msra.gmra.mrb[4].mxu1 %vm342_vm11, %v1082_v50 }
  0xc8   :  { %v300_v14 = vpop.permute.xlu0 %299 }
  0xca   :  { %897 = vmatmul.mubr.msk.bf16.vlgmr.msra.gmra.mrb[4].mxu0 %vm342_vm11, %v1082_v50 }
 0x17a   :  { %v431_v39 = vpop.f32.mrb[0].mxu1 }
 0x17b   :  { %v432_v40 = vadd.f32 %v431_v39, %v300_v14  ;;  %v918_v41 = vpop.f32.mrb[1].mxu1 }
 0x17c   :  { %v434_v42 = vpop.f32.mrb[2].mxu1 }
 0x17d   :  { %v390_v43 = vpop.f32.mrb[0].mxu0  ;;  %v439_v44 = vmul.f32 0.2, %v432_v40  ;;  %v919_v45 = vpop.f32.mrb[3].mxu1 }
 0x17e   :  { %v391_v46 = vadd.f32 %v390_v43, %v300_v14  ;;  %v392_v47 = vpop.f32.mrb[1].mxu0 }
 0x17f   :  { %v393_v48 = vadd.f32 %v392_v47, %v300_v14  ;;  %v442_v49 = vmax.f32 %v432_v40, %v439_v44  ;;  %v394_v51 = vpop.f32.mrb[2].mxu0 }
 0x180   :  { %v437_v52 = vmul.f32 0.2, %v391_v46  ;;  %v395_v53 = vpop.f32.mrb[3].mxu0 }
 0x181   :  { %v438_v54 = vmul.f32 0.2, %v393_v48  ;;  %445 = vst [vmem:[%s1142_s3 + $0x10] sm:$0xff] %v442_v49 }
 0x182   :  { %v440_v50 = vmax.f32 %v391_v46, %v437_v52 }
 0x183   :  { %v441_v55 = vmax.f32 %v393_v48, %v438_v54 }
 0x184   :  { %443 = vst [vmem:[%s1142_s3] sm:$0xff] %v440_v50 }
 0x185   :  { %444 = vst [vmem:[%s1142_s3 + $0x8] sm:$0xff] %v441_v55 }
 0x19a   :  { %v842_v56 = vpop.f32.mrb[4].mxu1 }
 0x19b   :  { %v843_v57 = vadd.f32 %v842_v56, %v300_v14  ;;  %v928_v58 = vpop.f32.mrb[5].mxu1 }
 0x19c   :  { %v845_v60 = vpop.f32.mrb[6].mxu1 }
 0x19d   :  { %v801_v59 = vpop.f32.mrb[4].mxu0  ;;  %v850_v61 = vmul.f32 0.2, %v843_v57  ;;  %v929_v0 = vpop.f32.mrb[7].mxu1 }
 0x19e   :  { %v802_v62 = vadd.f32 %v801_v59, %v300_v14  ;;  %v803_v63 = vpop.f32.mrb[5].mxu0 }
 0x19f   :  { %v804_v1 = vadd.f32 %v803_v63, %v300_v14  ;;  %v805_v2 = vpop.f32.mrb[6].mxu0  ;;  %v853_v3 = vmax.f32 %v843_v57, %v850_v61 }
 0x1a0   :  { %v848_v4 = vmul.f32 0.2, %v802_v62  ;;  %v806_v5 = vpop.f32.mrb[7].mxu0 }
 0x1a1   :  { %v849_v6 = vmul.f32 0.2, %v804_v1  ;;  %901 = vst [vmem:[%s1142_s3 + $0x28] sm:$0xff] %v853_v3 }
 0x1a2   :  { %v851_v7 = vmax.f32 %v802_v62, %v848_v4 }
 0x1a3   :  { %v852_v8 = vmax.f32 %v804_v1, %v849_v6 }
 0x1a4   :  { %899 = vst [vmem:[%s1142_s3 + $0x18] sm:$0xff] %v851_v7 }
 0x1a5   :  { %900 = vst [vmem:[%s1142_s3 + $0x20] sm:$0xff] %v852_v8 }

</bundles_post_ra>
